<compile_context>
chip_gen: v6e
topology: v6e:2x2x1
jax: 0.10.0
libtpu: 0.0.40
codegen_flags: <defaults>
</compile_context>

<pallas_src>
import functools
import math

import jax
import jax.numpy as jnp
from jax import lax
from jax.experimental import pallas as pl
from jax.experimental.pallas import tpu as pltpu

# Keep XLA-side reference matmuls in true f32 so the Pallas f32 kernels match.
jax.config.update("jax_default_matmul_precision", "highest")

# Per-step tile working-set budget (fits v5e/v6e/v7x with headroom).
_VMEM_TILE_BUDGET = 20 * 1024 * 1024

# Set to jnp.bfloat16 on v6e/v7x for much higher MXU throughput when a looser
# tolerance vs. the f32 module is acceptable; default f32 keeps exact parity.
ATTN_MXU_DTYPE = jnp.float32


# --------------------------------------------------------------------------
# small helpers
# --------------------------------------------------------------------------
def _round_up(x, m):
    return ((x + m - 1) // m) * m


def _vmem_limit(estimate_bytes):
    return int(min(56 << 20, max(24 << 20, 2 * int(estimate_bytes))))


def _erf_approx(x):
    # Abramowitz & Stegun 7.1.26 (max abs err ~1.5e-7); only exp + VPU ops, so
    # it always lowers in Mosaic (lax.erf support is not relied upon).
    a1, a2, a3, a4, a5 = (0.254829592, -0.284496736, 1.421413741,
                          -1.453152027, 1.061405429)
    p = 0.3275911
    z = jnp.abs(x)
    t = 1.0 / (1.0 + p * z)
    poly = ((((a5 * t + a4) * t + a3) * t + a2) * t + a1) * t
    e = 1.0 - poly * jnp.exp(-z * z)
    return jnp.where(x < 0.0, -e, e)


def _gelu_exact(x):
    return 0.5 * x * (1.0 + _erf_approx(x * 0.7071067811865476))


def _ln_jax(x, g, b=None, eps=None, stable=False):
    """Plain-JAX LayerNorm (used for tiny tensors and the reference)."""
    if eps is None:
        eps = 1e-5 if x.dtype == jnp.float32 else 1e-3
    xf = x.astype(jnp.float32)
    if stable:
        xf = xf / jnp.max(xf, axis=-1, keepdims=True)
    mean = jnp.mean(xf, axis=-1, keepdims=True)
    var = jnp.mean((xf - mean) ** 2, axis=-1, keepdims=True)
    y = (xf - mean) * lax.rsqrt(var + eps) * jnp.asarray(g, jnp.float32)
    if b is not None:
        y = y + jnp.asarray(b, jnp.float32)
    return y.astype(x.dtype)


# --------------------------------------------------------------------------
# LayerNorm over the last dim (custom g-only LN and nn.LayerNorm)
# --------------------------------------------------------------------------
def _ln_kernel(x_ref, g_ref, b_ref, o_ref, *, eps, stable):
    x = x_ref[...].astype(jnp.float32)                       # (TM, D)
    if stable:
        x = x / jnp.max(x, axis=-1, keepdims=True)
    inv_d = 1.0 / x.shape[-1]
    mean = jnp.sum(x, axis=-1, keepdims=True) * inv_d
    var = jnp.sum(x * x, axis=-1, keepdims=True) * inv_d - mean * mean
    var = jnp.maximum(var, 0.0)           # guard one-pass cancellation
    y = (x - mean) * lax.rsqrt(var + eps)
    y = y * g_ref[...].astype(jnp.float32) + b_ref[...].astype(jnp.float32)
    o_ref[...] = y.astype(o_ref.dtype)


def layer_norm(x, g, b=None, *, eps=None, stable=False):
    """LayerNorm over the last dim.  g: (D,), optional b: (D,)."""
    if eps is None:
        eps = 1e-5 if x.dtype == jnp.float32 else 1e-3
    *lead, D = x.shape
    M = math.prod(lead) if lead else 1
    x2 = x.reshape(M, D)
    g2 = jnp.asarray(g, jnp.float32).reshape(1, D)
    b2 = (jnp.zeros((1, D), jnp.float32) if b is None
          else jnp.asarray(b, jnp.float32).reshape(1, D))

    itemsize = jnp.dtype(x.dtype).itemsize
    bytes_per_row = (4 * itemsize + 8) * D   # dbl-buffered in/out + f32 temps
    TM = _VMEM_TILE_BUDGET // max(bytes_per_row, 1)
    TM = max(8, min((int(TM) // 8) * 8, 1024, _round_up(M, 8)))
    grid = (pl.cdiv(M, TM),)

    cost = pl.CostEstimate(flops=8 * M * D, transcendentals=M,
                           bytes_accessed=2 * M * D * itemsize)
    out = pl.pallas_call(
        functools.partial(_ln_kernel, eps=float(eps), stable=stable),
        out_shape=jax.ShapeDtypeStruct((M, D), x.dtype),
        grid_spec=pltpu.PrefetchScalarGridSpec(
            num_scalar_prefetch=0, grid=grid,
            in_specs=[pl.BlockSpec((TM, D), lambda i: (i, 0)),
                      pl.BlockSpec((1, D), lambda i: (0, 0)),
                      pl.BlockSpec((1, D), lambda i: (0, 0))],
            out_specs=pl.BlockSpec((TM, D), lambda i: (i, 0))),
        compiler_params=pltpu.CompilerParams(
            dimension_semantics=("parallel",),
            vmem_limit_bytes=_vmem_limit(bytes_per_row * TM)),
        cost_estimate=cost,
    )(x2, g2, b2)
    return out.reshape(*lead, D)


# --------------------------------------------------------------------------
# Linear layer with fused epilogue: [+bias] [GELU] [LayerNorm] [+residual]
# --------------------------------------------------------------------------
def _linear_kernel(*refs, has_bias, act_gelu, has_ln, has_ln_b, has_res, ln_eps):
    it = iter(refs)
    x_ref, w_ref = next(it), next(it)
    b_ref = next(it) if has_bias else None
    g_ref = next(it) if has_ln else None
    lb_ref = next(it) if has_ln_b else None
    r_ref = next(it) if has_res else None
    o_ref, acc_ref = next(it), next(it)

    @pl.when(pl.program_id(2) == 0)
    def _():
        acc_ref[...] = jnp.zeros_like(acc_ref)

    acc_ref[...] += jnp.dot(x_ref[...], w_ref[...],
                            preferred_element_type=jnp.float32)

    @pl.when(pl.program_id(2) == pl.num_programs(2) - 1)
    def _():
        y = acc_ref[...]
        if has_bias:
            y = y + b_ref[...].astype(jnp.float32)
        if act_gelu:
            y = _gelu_exact(y)                       # exact-erf GELU, EUP exp
        if has_ln:                                   # requires TN == full N
            inv_d = 1.0 / y.shape[-1]
            mean = jnp.sum(y, axis=-1, keepdims=True) * inv_d
            var = jnp.maximum(
                jnp.sum(y * y, axis=-1, keepdims=True) * inv_d - mean * mean,
                0.0)
            y = (y - mean) * lax.rsqrt(var + ln_eps)
            y = y * g_ref[...].astype(jnp.float32)
            if has_ln_b:
                y = y + lb_ref[...].astype(jnp.float32)
        if has_res:
            y = y + r_ref[...].astype(jnp.float32)
        o_ref[...] = y.astype(o_ref.dtype)


def linear(x, w, b=None, *, activation=None, ln_g=None, ln_b=None,
           ln_eps=1e-5, residual=None):
    """x: (..., K) @ w: (K, N), with optional fused bias / GELU / LN / residual."""
    assert activation in (None, "gelu")
    *lead, K = x.shape
    Kw, N = w.shape
    assert K == Kw, (K, Kw)
    M = math.prod(lead) if lead else 1
    x2 = x.reshape(M, K)
    w2 = w

    has_bias = b is not None
    has_ln = ln_g is not None
    has_ln_b = has_ln and (ln_b is not None)
    has_res = residual is not None
    act_gelu = activation == "gelu"

    # ---- N tile ----
    if has_ln:
        TN = N                       # epilogue LayerNorm reduces over full row
    elif N <= 1024:
        TN = N
    else:
        TN = 512                     # lane-aligned (multiple of 128)

    # ---- K tile: keep the contraction exact (full K, or split + zero-pad so
    # partial reduction blocks never contribute garbage) ----
    w_block_budget = 8 << 20
    if K * TN * 4 <= w_block_budget or K <= 512:
        TK, Kp = K, K
    else:
        TK = max(512, ((w_block_budget // (TN * 4)) // 128) * 128)
        Kp = _round_up(K, TK)
    if Kp != K:
        x2 = jnp.pad(x2, ((0, 0), (0, Kp - K)))
        w2 = jnp.pad(w2, ((0, Kp - K), (0, 0)))

    # ---- M tile from the VMEM budget (double-buffered blocks + f32 acc) ----
    fixed = 2 * TK * TN * 4
    per_row = (2 * TK + (5 if has_res else 3) * TN) * 4
    TM = ((_VMEM_TILE_BUDGET - fixed) // per_row) if _VMEM_TILE_BUDGET > fixed else 8
    TM = max(8, min((int(TM) // 8) * 8, 1024, _round_up(M, 8)))

    grid = (pl.cdiv(M, TM), pl.cdiv(N, TN), Kp // TK)

    in_specs = [pl.BlockSpec((TM, TK), lambda i, j, k: (i, k)),
                pl.BlockSpec((TK, TN), lambda i, j, k: (k, j))]
    args = [x2, w2]
    if has_bias:
        in_specs.append(pl.BlockSpec((1, TN), lambda i, j, k: (0, j)))
        args.append(jnp.asarray(b, jnp.float32).reshape(1, N))
    if has_ln:
        in_specs.append(pl.BlockSpec((1, N), lambda i, j, k: (0, 0)))
        args.append(jnp.asarray(ln_g, jnp.float32).reshape(1, N))
        if has_ln_b:
            in_specs.append(pl.BlockSpec((1, N), lambda i, j, k: (0, 0)))
            args.append(jnp.asarray(ln_b, jnp.float32).reshape(1, N))
    if has_res:
        in_specs.append(pl.BlockSpec((TM, TN), lambda i, j, k: (i, j)))
        args.append(residual.reshape(M, N))

    itemsize = jnp.dtype(x.dtype).itemsize
    cost = pl.CostEstimate(
        flops=2 * M * N * K,
        transcendentals=(M * N if act_gelu else 0) + (M if has_ln else 0),
        bytes_accessed=(M * K + K * N + M * N * (2 if has_res else 1)) * itemsize)

    kernel = functools.partial(
        _linear_kernel, has_bias=has_bias, act_gelu=act_gelu, has_ln=has_ln,
        has_ln_b=has_ln_b, has_res=has_res, ln_eps=float(ln_eps))

    out = pl.pallas_call(
        kernel,
        out_shape=jax.ShapeDtypeStruct((M, N), x.dtype),
        grid_spec=pltpu.PrefetchScalarGridSpec(
            num_scalar_prefetch=0, grid=grid,
            in_specs=in_specs,
            out_specs=pl.BlockSpec((TM, TN), lambda i, j, k: (i, j)),
            scratch_shapes=[pltpu.VMEM((TM, TN), jnp.float32)]),
        compiler_params=pltpu.CompilerParams(
            dimension_semantics=("parallel", "parallel", "arbitrary"),
            vmem_limit_bytes=_vmem_limit(fixed + TM * per_row)),
        cost_estimate=cost,
    )(*args)
    return out.reshape(*lead, N)


# --------------------------------------------------------------------------
# Fused Perceiver attention core: grid over B only, all heads per step,
# kv from x and from latents kept as two inputs (no HBM concat).
# --------------------------------------------------------------------------
def _attn_kernel(q_ref, kvx_ref, kvl_ref, qs_ref, ks_ref, o_ref, *,
                 heads, dim_head, scale, mxu_dtype):
    inner = heads * dim_head
    qf = q_ref[...].astype(jnp.float32)        # (Lq, inner)
    kvx = kvx_ref[...].astype(jnp.float32)     # (Lx, 2*inner)
    kvl = kvl_ref[...].astype(jnp.float32)     # (Lq, 2*inner)
    qs = qs_ref[...].astype(jnp.float32)       # (1, Dh)
    ks = ks_ref[...].astype(jnp.float32)       # (1, Dh)

    def l2norm(t):   # F.normalize(t, dim=-1): t / max(||t||, 1e-12)
        return t * lax.rsqrt(jnp.maximum(jnp.sum(t * t, -1, keepdims=True),
                                         1e-24))

    for h in range(heads):                     # static unroll, lane slices
        lo, hi = h * dim_head, (h + 1) * dim_head
        qh = l2norm(qf[:, lo:hi]) * qs
        kxh = l2norm(kvx[:, lo:hi]) * ks
        klh = l2norm(kvl[:, lo:hi]) * ks
        vxh = kvx[:, inner + lo:inner + hi]
        vlh = kvl[:, inner + lo:inner + hi]

        qh_m = qh.astype(mxu_dtype)
        sim_x = jnp.einsum("qd,kd->qk", qh_m, kxh.astype(mxu_dtype),
                           preferred_element_type=jnp.float32) * scale
        sim_l = jnp.einsum("qd,kd->qk", qh_m, klh.astype(mxu_dtype),
                           preferred_element_type=jnp.float32) * scale
        m = jnp.maximum(jnp.max(sim_x, -1, keepdims=True),
                        jnp.max(sim_l, -1, keepdims=True))
        p_x = jnp.exp(sim_x - m)
        p_l = jnp.exp(sim_l - m)
        denom = (jnp.sum(p_x, -1, keepdims=True)
                 + jnp.sum(p_l, -1, keepdims=True))
        num = (jnp.dot(p_x.astype(mxu_dtype), vxh.astype(mxu_dtype),
                       preferred_element_type=jnp.float32)
               + jnp.dot(p_l.astype(mxu_dtype), vlh.astype(mxu_dtype),
                         preferred_element_type=jnp.float32))
        # EUP reciprocal of the (Lq,1) denominator + one Newton step for ~f32
        # accuracy (perf review: divide moved after PV, off the VALU path).
        inv = pl.reciprocal(denom, approx=True)
        inv = inv * (2.0 - denom * inv)
        # Per-head VMEM store; the HBM writeback is the full lane-dense
        # (Lq, heads*dim_head) block per batch.
        o_ref[:, lo:hi] = (num * inv).astype(o_ref.dtype)


def attention_core(q, kv_x, kv_lat, q_scale, k_scale, *, heads, dim_head,
                   scale, mxu_dtype=ATTN_MXU_DTYPE):
    """q: (B, Lq, H*Dh); kv_x: (B, Lx, 2*H*Dh); kv_lat: (B, Lq, 2*H*Dh)."""
    B, Lq, inner = q.shape
    Lx = kv_x.shape[1]
    assert inner == heads * dim_head
    qs = jnp.asarray(q_scale, jnp.float32).reshape(1, dim_head)
    ks = jnp.asarray(k_scale, jnp.float32).reshape(1, dim_head)

    itemsize = jnp.dtype(q.dtype).itemsize
    Lk = Lx + Lq
    cost = pl.CostEstimate(
        flops=4 * B * heads * Lq * Lk * dim_head,
        transcendentals=B * heads * Lq * Lk,
        bytes_accessed=B * (2 * Lq * inner + 2 * Lk * inner) * itemsize)
    est = (2 * (Lq * inner + Lx * 2 * inner + Lq * 2 * inner + Lq * inner)
           * itemsize + 6 * heads * Lq * Lk * 4)

    return pl.pallas_call(
        functools.partial(_attn_kernel, heads=heads, dim_head=dim_head,
                          scale=float(scale), mxu_dtype=mxu_dtype),
        out_shape=jax.ShapeDtypeStruct((B, Lq, inner), q.dtype),
        grid_spec=pltpu.PrefetchScalarGridSpec(
            num_scalar_prefetch=0, grid=(B,),
            in_specs=[
                pl.BlockSpec((None, Lq, inner), lambda b: (b, 0, 0)),
                pl.BlockSpec((None, Lx, 2 * inner), lambda b: (b, 0, 0)),
                pl.BlockSpec((None, Lq, 2 * inner), lambda b: (b, 0, 0)),
                pl.BlockSpec((1, dim_head), lambda b: (0, 0)),
                pl.BlockSpec((1, dim_head), lambda b: (0, 0)),
            ],
            out_specs=pl.BlockSpec((None, Lq, inner), lambda b: (b, 0, 0))),
        compiler_params=pltpu.CompilerParams(
            dimension_semantics=("parallel",),        # B>=2 keeps both TCs busy
            vmem_limit_bytes=_vmem_limit(est)),
        cost_estimate=cost,
    )(q, kv_x, kv_lat, qs, ks)


# --------------------------------------------------------------------------
# Module-level forward (Pallas kernels + thin JAX glue)
# --------------------------------------------------------------------------
def perceiver_attention(p, x, latents, *, heads, dim_head, scale=8.0):
    xn = layer_norm(x, p["norm_g"], p["norm_b"], eps=1e-5)          # nn.LayerNorm
    ln = layer_norm(latents, p["norm_lat_g"], p["norm_lat_b"], eps=1e-5)

    q = linear(ln, p["w_q"])                                        # (B, m, inner)
    # kv projection applied to x and to latents separately: identical row-wise
    # math, but the concat([xn, ln]) tensor is never materialized in HBM.
    kv_x = linear(xn, p["w_kv"])                                    # (B, n, 2*inner)
    kv_l = linear(ln, p["w_kv"])                                    # (B, m, 2*inner)

    out = attention_core(q, kv_x, kv_l, p["q_scale"], p["k_scale"],
                         heads=heads, dim_head=dim_head, scale=scale)
    # to_out Linear -> nn.LayerNorm -> + latents residual, fused in the epilogue.
    return linear(out, p["w_out"], ln_g=p["out_ln_g"], ln_b=p["out_ln_b"],
                  ln_eps=1e-5, residual=latents)


def feed_forward(p, x, *, eps):
    h = layer_norm(x, p["ln1_g"])                    # custom g-only LN
    # Linear -> exact GELU -> custom LN(hidden), all fused in the w1 epilogue.
    h = linear(h, p["w1"], activation="gelu", ln_g=p["ln2_g"], ln_eps=eps)
    # final Linear with the residual add fused in the epilogue.
    return linear(h, p["w2"], residual=x)


def perceiver_resampler(params, x, *, heads, dim_head, scale=8.0):
    """x: (B, n, dim) -> (B, num_latents_mean_pooled + num_latents, dim)."""
    # TODO(synk): the optional attention `mask` argument of the PyTorch forward
    # is not implemented (this path is mask=None; the internal masked_mean call
    # uses an all-True mask, i.e. a plain mean).
    B, n, dim = x.shape
    pos = params["pos_emb"][:n]                      # arange(n) lookup == slice
    x_with_pos = x + pos[None]

    latents = jnp.broadcast_to(params["latents"],
                               (B,) + params["latents"].shape)

    mp = params["mean_pool"]
    if mp is not None:
        # Tiny (B, dim) tensors: per the perf review, a pallas_call's fixed cost
        # dwarfs this work, so the mean-pool LN + projection stay in XLA.
        pooled = jnp.mean(x, axis=1)                               # (B, dim)
        pooled = _ln_jax(pooled, mp["ln_g"])                       # custom LN
        mp_lat = pooled @ mp["w"] + mp["b"]
        n_mp = mp["w"].shape[1] // dim
        latents = jnp.concatenate(
            [mp_lat.reshape(B, n_mp, dim), latents], axis=1)

    eps_custom = 1e-5 if x.dtype == jnp.float32 else 1e-3
    for layer in params["layers"]:
        latents = perceiver_attention(layer["attn"], x_with_pos, latents,
                                      heads=heads, dim_head=dim_head,
                                      scale=scale)          # residual fused
        latents = feed_forward(layer["ff"], latents, eps=eps_custom)
    return latents


# --------------------------------------------------------------------------
# Pure-JAX reference mirroring the PyTorch forward
# --------------------------------------------------------------------------
def _l2norm_ref(t):
    nrm = jnp.sqrt(jnp.sum(t * t, axis=-1, keepdims=True))
    return t / jnp.maximum(nrm, 1e-12)


def _attn_ref(p, x, latents, *, heads, dim_head, scale):
    B = x.shape[0]
    m = latents.shape[1]
    inner = heads * dim_head
    xn = _ln_jax(x, p["norm_g"], p["norm_b"], eps=1e-5)
    ln = _ln_jax(latents, p["norm_lat_g"], p["norm_lat_b"], eps=1e-5)
    q = ln @ p["w_q"]
    kv = jnp.concatenate([xn, ln], axis=1) @ p["w_kv"]
    k, v = kv[..., :inner], kv[..., inner:]
    sh = lambda t: t.reshape(t.shape[0], t.shape[1], heads, dim_head
                             ).transpose(0, 2, 1, 3)
    q, k, v = sh(q), sh(k), sh(v)
    q, k = _l2norm_ref(q), _l2norm_ref(k)
    q = q * p["q_scale"]
    k = k * p["k_scale"]
    sim = jnp.einsum("bhid,bhjd->bhij", q, k) * scale
    attn = jax.nn.softmax(sim, axis=-1)
    out = jnp.einsum("bhij,bhjd->bhid", attn, v)
    out = out.transpose(0, 2, 1, 3).reshape(B, m, inner)
    out = out @ p["w_out"]
    return _ln_jax(out, p["out_ln_g"], p["out_ln_b"], eps=1e-5)


def _ff_ref(p, x):
    h = _ln_jax(x, p["ln1_g"])
    h = h @ p["w1"]
    h = jax.nn.gelu(h, approximate=False)
    h = _ln_jax(h, p["ln2_g"])
    return h @ p["w2"]


def perceiver_resampler_ref(params, x, *, heads, dim_head, scale=8.0):
    B, n, dim = x.shape
    pos = params["pos_emb"][:n]
    x_pos = x + pos[None]
    latents = jnp.broadcast_to(params["latents"],
                               (B,) + params["latents"].shape)
    mp = params["mean_pool"]
    if mp is not None:
        pooled = jnp.mean(x, axis=1)
        pooled = _ln_jax(pooled, mp["ln_g"])
        mp_lat = pooled @ mp["w"] + mp["b"]
        n_mp = mp["w"].shape[1] // dim
        latents = jnp.concatenate([mp_lat.reshape(B, n_mp, dim), latents],
                                  axis=1)
    for layer in params["layers"]:
        latents = _attn_ref(layer["attn"], x_pos, latents, heads=heads,
                            dim_head=dim_head, scale=scale) + latents
        latents = _ff_ref(layer["ff"], latents) + latents
    return latents


# --------------------------------------------------------------------------
# Deterministic parameter construction (mirrors the module's parameter set)
# --------------------------------------------------------------------------
def init_params(key, *, dim, depth, dim_head, heads, num_latents,
                num_latents_mean_pooled, max_seq_len, ff_mult):
    inner = dim_head * heads
    hidden = int(dim * ff_mult)
    kit = iter(jax.random.split(key, 128))

    def randn(shape, scale):
        return scale * jax.random.normal(next(kit), shape, jnp.float32)

    def near_ones(shape):
        return 1.0 + randn(shape, 0.1)

    params = {
        "pos_emb": randn((max_seq_len, dim), 0.02),
        "latents": randn((num_latents, dim), 1.0),
        "mean_pool": None,
        "layers": [],
    }
    if num_latents_mean_pooled > 0:
        params["mean_pool"] = {
            "ln_g": near_ones((dim,)),
            "w": randn((dim, dim * num_latents_mean_pooled), dim ** -0.5),
            "b": randn((dim * num_latents_mean_pooled,), 0.02),
        }
    for _ in range(depth):
        attn = {
            "norm_g": near_ones((dim,)), "norm_b": randn((dim,), 0.02),
            "norm_lat_g": near_ones((dim,)), "norm_lat_b": randn((dim,), 0.02),
            "w_q": randn((dim, inner), dim ** -0.5),
            "w_kv": randn((dim, 2 * inner), dim ** -0.5),
            "q_scale": near_ones((dim_head,)),
            "k_scale": near_ones((dim_head,)),
            "w_out": randn((inner, dim), inner ** -0.5),
            "out_ln_g": near_ones((dim,)), "out_ln_b": randn((dim,), 0.02),
        }
        ff = {
            "ln1_g": near_ones((dim,)),
            "w1": randn((dim, hidden), dim ** -0.5),
            "ln2_g": near_ones((hidden,)),
            "w2": randn((hidden, dim), hidden ** -0.5),
        }
        params["layers"].append({"attn": attn, "ff": ff})
    return params


# --------------------------------------------------------------------------
if __name__ == "__main__":
    key = jax.random.PRNGKey(0)

    dim, depth, dim_head, heads = 32, 2, 16, 2
    num_latents, num_latents_mean_pooled = 8, 4
    max_seq_len, ff_mult = 64, 2
    B, seq = 2, 16

    k_params, k_x = jax.random.split(key)
    params = init_params(
        k_params, dim=dim, depth=depth, dim_head=dim_head, heads=heads,
        num_latents=num_latents,
        num_latents_mean_pooled=num_latents_mean_pooled,
        max_seq_len=max_seq_len, ff_mult=ff_mult)
    x = jax.random.normal(k_x, (B, seq, dim), jnp.float32)

    out = perceiver_resampler(params, x, heads=heads, dim_head=dim_head)
    out = jax.block_until_ready(out)

    ref = perceiver_resampler_ref(params, x, heads=heads, dim_head=dim_head)
    assert out.shape == (B, num_latents_mean_pooled + num_latents, dim)
    assert out.dtype == x.dtype
    max_err = float(jnp.max(jnp.abs(out - ref)))
    assert jnp.allclose(out, ref, atol=2e-3, rtol=2e-3), (
        f"mismatch vs reference, max abs err {max_err}")

    print("KERNEL_OK")
</pallas_src>

<mosaic_0001>
module attributes {stable_mosaic.version = 11 : i64} {
  func.func @_ln_kernel(%arg0: i32, %arg1: memref<32x32xf32, #tpu.memory_space<vmem>>, %arg2: memref<1x32xf32, #tpu.memory_space<vmem>>, %arg3: memref<1x32xf32, #tpu.memory_space<vmem>>, %arg4: memref<32x32xf32, #tpu.memory_space<vmem>>) attributes {dimension_semantics = [#tpu.dimension_semantics<parallel>], iteration_bounds = array<i64: 1>, scalar_prefetch = 0 : i64, scratch_operands = 0 : i64, tpu.core_type = #tpu.core_type<tc>, window_params = [{transform_indices = @transform_0, window_bounds = array<i64: 32, 32>}, {pipeline_mode = #tpu.pipeline_mode<synchronous>, transform_indices = @transform_1, window_bounds = array<i64: 1, 32>}, {pipeline_mode = #tpu.pipeline_mode<synchronous>, transform_indices = @transform_2, window_bounds = array<i64: 1, 32>}, {transform_indices = @transform_3, window_bounds = array<i64: 32, 32>}]} {
    %c0 = arith.constant 0 : index
    %c0_0 = arith.constant 0 : index
    %0 = vector.load %arg1[%c0, %c0_0] : memref<32x32xf32, #tpu.memory_space<vmem>>, vector<32x32xf32>
    %cst = arith.constant dense<0.000000e+00> : vector<32xf32>
    %1 = vector.multi_reduction <add>, %0, %cst [1] : vector<32x32xf32> to vector<32xf32>
    %2 = vector.shape_cast %1 : vector<32xf32> to vector<32x1xf32>
    %cst_1 = arith.constant 3.125000e-02 : f32
    %3 = vector.broadcast %cst_1 : f32 to vector<32x1xf32>
    %4 = arith.mulf %2, %3 : vector<32x1xf32>
    %5 = arith.mulf %0, %0 : vector<32x32xf32>
    %cst_2 = arith.constant dense<0.000000e+00> : vector<32xf32>
    %6 = vector.multi_reduction <add>, %5, %cst_2 [1] : vector<32x32xf32> to vector<32xf32>
    %7 = vector.shape_cast %6 : vector<32xf32> to vector<32x1xf32>
    %cst_3 = arith.constant 3.125000e-02 : f32
    %8 = vector.broadcast %cst_3 : f32 to vector<32x1xf32>
    %9 = arith.mulf %7, %8 : vector<32x1xf32>
    %10 = arith.mulf %4, %4 : vector<32x1xf32>
    %11 = arith.subf %9, %10 : vector<32x1xf32>
    %cst_4 = arith.constant 0.000000e+00 : f32
    %12 = vector.broadcast %cst_4 : f32 to vector<32x1xf32>
    %13 = arith.maximumf %11, %12 : vector<32x1xf32>
    %14 = vector.broadcast %4 : vector<32x1xf32> to vector<32x32xf32>
    %15 = arith.subf %0, %14 : vector<32x32xf32>
    %cst_5 = arith.constant 9.99999974E-6 : f32
    %16 = vector.broadcast %cst_5 : f32 to vector<32x1xf32>
    %17 = arith.addf %13, %16 : vector<32x1xf32>
    %18 = math.rsqrt %17 : vector<32x1xf32>
    %19 = vector.broadcast %18 : vector<32x1xf32> to vector<32x32xf32>
    %20 = arith.mulf %15, %19 : vector<32x32xf32>
    %c0_6 = arith.constant 0 : index
    %c0_7 = arith.constant 0 : index
    %21 = vector.load %arg2[%c0_6, %c0_7] : memref<1x32xf32, #tpu.memory_space<vmem>>, vector<1x32xf32>
    %22 = vector.broadcast %21 : vector<1x32xf32> to vector<32x32xf32>
    %23 = arith.mulf %20, %22 : vector<32x32xf32>
    %c0_8 = arith.constant 0 : index
    %c0_9 = arith.constant 0 : index
    %24 = vector.load %arg3[%c0_8, %c0_9] : memref<1x32xf32, #tpu.memory_space<vmem>>, vector<1x32xf32>
    %25 = vector.broadcast %24 : vector<1x32xf32> to vector<32x32xf32>
    %26 = arith.addf %23, %25 : vector<32x32xf32>
    %c0_10 = arith.constant 0 : index
    %c0_11 = arith.constant 0 : index
    %27 = vector.load %arg4[%c0_10, %c0_11] : memref<32x32xf32, #tpu.memory_space<vmem>>, vector<32x32xf32>
    tpu.vector_store %arg4[%c0_10, %c0_11], %26 {strides = array<i32>} : memref<32x32xf32, #tpu.memory_space<vmem>>, vector<32x32xf32>,
    return
  }
  func.func @transform_0(%arg0: i32) -> (i32, i32) {
    %c0_i32 = arith.constant 0 : i32
    %c0_i32_0 = arith.constant 0 : i32
    return %arg0, %c0_i32 : i32, i32
  }
  func.func @transform_1(%arg0: i32) -> (i32, i32) {
    %c0_i32 = arith.constant 0 : i32
    %c0_i32_0 = arith.constant 0 : i32
    %c0_i32_1 = arith.constant 0 : i32
    return %c0_i32, %c0_i32_0 : i32, i32
  }
  func.func @transform_2(%arg0: i32) -> (i32, i32) {
    %c0_i32 = arith.constant 0 : i32
    %c0_i32_0 = arith.constant 0 : i32
    %c0_i32_1 = arith.constant 0 : i32
    return %c0_i32, %c0_i32_0 : i32, i32
  }
  func.func @transform_3(%arg0: i32) -> (i32, i32) {
    %c0_i32 = arith.constant 0 : i32
    %c0_i32_0 = arith.constant 0 : i32
    return %arg0, %c0_i32 : i32, i32
  }
}

</mosaic_0001>

<bundles_post_ra>
// kernel: tpu_custom_call.1
= control target key start
LH: loop header
LB: loop body
LE: loop exit
PB: predicated region body
PF: predicated region fallthrough
CT: control target
= control target key end

     0   :  { %8 = vsyncpa [#allocation3], 0  ;;  %s271_s0 = inlined_call_operand.hbm [shape: f32[32,32], index: 0, kind: input, shape index: {}]   ;;  %s272_s1 = inlined_call_operand.vmem [shape: f32[1,32], index: 1, kind: input, shape index: {}]   ;;  %s273_s2 = inlined_call_operand.vmem [shape: f32[1,32], index: 2, kind: input, shape index: {}]   ;;  %s274_s3 = inlined_call_operand.hbm [shape: f32[32,32], index: 3, kind: output, shape index: {}]  }
   0x1   :  { %9 = vsyncpa [#allocation4], 0  ;;  %s199_s12 = smov [#allocation2]  }
   0x2   :  { %s15_s13 = sshll.u32 %s199_s12, 4  ;;  %s16_s13 = int_to_ptr.vmem [resolvable:$true] %s15_s13 }
   0x3   :  { %s163_s14 = scalar_lea.vmem %s16_s13, 512  ;;  %p168_p1 = scmp.lt.s32.totalorder %s16_s13, %s16_s13 }
   0x4   :  { %p164_p0 = scmp.ne.s32.totalorder %s16_s13, %s163_s14  ;;  %p169_p2 = scmp.lt.s32.totalorder %s163_s14, %s163_s14 }
   0x6   :  { %p170_p3 = por %p169_p2, %p168_p1 }
   0x8   :  { %p171_p4 = pnand %p170_p3, %p164_p0 }
   0xa   :  { %174 = shalt.err (!%p171_p4)
}
   0xb   :  { %s200_s15 = smov 128   ;;  %s201_s16 = smov 8  }
   0xc   :  { %21 = dma.hbm_to_vmem [thread:$0]  %s271_s0, 512, %s16_s13, [#allocation3], %s200_s15, %s200_s15, %s201_s16  }
   0xd   :  { %195 = dma.done.wait [#allocation3], 512  }
   0xe   :  { %196 = vsyncadd [#allocation3], 4294966784  ;;  %vm33_vm0 = vcmask 261120   ;;  %v229_v0 = vld [vmem:[#allocation2 + $0x10] sm:$0xff]  ;;  %v231_v1 = vld [vmem:[#allocation2] sm:$0xff] }
   0xf   :  { %v233_v2 = vld [vmem:[#allocation2 + $0x18] sm:$0xff]  ;;  %v40_v3 = vsel %vm33_vm0, %v229_v0, 0.0  ;;  %v34_v4 = vsel %vm33_vm0, %v231_v1, 0.0  ;;  %v30_v5 = vld [vmem:[#allocation2 + $0x8] sm:$0xff]  ;;  %v50_v9 = vmul.f32 %v231_v1, %v231_v1  ;;  %v52_v13 = vmul.f32 %v229_v0, %v229_v0  ;;  %v141_v51 = vld [vmem:[%s272_s1] ss:$0 sm:$0xff] }
  0x10   :  { %41 = vadd.xlane.f32.xlu1 %v40_v3  ;;  %35 = vadd.xlane.f32.xlu0 %v34_v4  ;;  %v43_v6 = vsel %vm33_vm0, %v233_v2, 0.0  ;;  %v37_v7 = vsel %vm33_vm0, %v30_v5, 0.0  ;;  %v51_v8 = vmul.f32 %v30_v5, %v30_v5  ;;  %v53_v12 = vmul.f32 %v233_v2, %v233_v2  ;;  %v142_v55 = vld [vmem:[%s273_s2] ss:$0 sm:$0xff]  ;;  %s202_s1 = smov [#allocation5]  }
  0x11   :  { %v54_v11 = vsel %vm33_vm0, %v50_v9, 0.0  ;;  %v60_v15 = vsel %vm33_vm0, %v52_v13, 0.0  ;;  %s129_s22 = sshll.u32 %s202_s1, 4  ;;  %s130_s22 = int_to_ptr.vmem [resolvable:$true] %s129_s22 }
  0x12   :  { %v57_v10 = vsel %vm33_vm0, %v51_v8, 0.0  ;;  %v63_v14 = vsel %vm33_vm0, %v53_v12, 0.0  ;;  %s175_s2 = scalar_lea.vmem %s130_s22, 512  ;;  %p180_p6 = scmp.lt.s32.totalorder %s130_s22, %s130_s22 }
  0x13   :  { %p176_p5 = scmp.ne.s32.totalorder %s130_s22, %s175_s2  ;;  %p181_p7 = scmp.lt.s32.totalorder %s175_s2, %s175_s2 }
  0x14   :  { %44 = vadd.xlane.f32.xlu1 %v43_v6  ;;  %38 = vadd.xlane.f32.xlu0 %v37_v7 }
  0x15   :  { %p182_p8 = por %p181_p7, %p180_p6 }
  0x17   :  { %p183_p9 = pnand %p182_p8, %p176_p5 }
  0x18   :  { %58 = vadd.xlane.f32.xlu1 %v57_v10  ;;  %55 = vadd.xlane.f32.xlu0 %v54_v11 }
  0x1c   :  { %64 = vadd.xlane.f32.xlu1 %v63_v14  ;;  %61 = vadd.xlane.f32.xlu0 %v60_v15 }
  0x99   :  { %v42_v16 = vpop.xlane.xlu1 %41  ;;  %v36_v17 = vpop.xlane.xlu0 %35 }
  0x9a   :  { %v46_v20 = vmul.f32 0.03125, %v36_v17  ;;  %v48_v22 = vmul.f32 0.03125, %v42_v16 }
  0x9c   :  { %v70_v26 = vmul.f32 %v46_v20, %v46_v20  ;;  %v72_v32 = vmul.f32 %v48_v22, %v48_v22  ;;  %v82_v50 = vsub.f32 %v231_v1, %v46_v20  ;;  %v84_v59 = vsub.f32 %v229_v0, %v48_v22 }
  0x9d   :  { %v45_v18 = vpop.xlane.xlu1 %44  ;;  %v39_v19 = vpop.xlane.xlu0 %38 }
  0x9e   :  { %v47_v21 = vmul.f32 0.03125, %v39_v19  ;;  %v49_v23 = vmul.f32 0.03125, %v45_v18 }
  0xa0   :  { %v71_v27 = vmul.f32 %v47_v21, %v47_v21  ;;  %v73_v33 = vmul.f32 %v49_v23, %v49_v23  ;;  %v83_v48 = vsub.f32 %v30_v5, %v47_v21  ;;  %v85_v56 = vsub.f32 %v233_v2, %v49_v23 }
  0xa1   :  { %v59_v24 = vpop.xlane.xlu1 %58  ;;  %v56_v25 = vpop.xlane.xlu0 %55 }
  0xa2   :  { %v67_v28 = vmul.f32 0.03125, %v59_v24  ;;  %v66_v29 = vmul.f32 0.03125, %v56_v25 }
  0xa4   :  { %v75_v30 = vsub.f32 %v67_v28, %v71_v27  ;;  %v74_v31 = vsub.f32 %v66_v29, %v70_v26 }
  0xa5   :  { %v65_v34 = vpop.xlane.xlu1 %64  ;;  %v62_v35 = vpop.xlane.xlu0 %61 }
  0xa6   :  { %v79_v36 = vmax.f32 %v75_v30, 0.0  ;;  %v78_v37 = vmax.f32 %v74_v31, 0.0  ;;  %v69_v38 = vmul.f32 0.03125, %v65_v34  ;;  %v68_v39 = vmul.f32 0.03125, %v62_v35 }
  0xa8   :  { %v87_v40 = vadd.f32 1e-05, %v79_v36  ;;  %v86_v41 = vadd.f32 1e-05, %v78_v37  ;;  %v77_v42 = vsub.f32 %v69_v38, %v73_v33  ;;  %v76_v43 = vsub.f32 %v68_v39, %v72_v32 }
  0xaa   :  { %147 = vrsqrt.f32 %v87_v40  ;;  %v81_v44 = vmax.f32 %v77_v42, 0.0  ;;  %v80_v45 = vmax.f32 %v76_v43, 0.0 }
  0xab   :  { %149 = vrsqrt.f32 %v86_v41 }
  0xac   :  { %v89_v46 = vadd.f32 1e-05, %v81_v44  ;;  %v88_v47 = vadd.f32 1e-05, %v80_v45 }
  0xae   :  { %151 = vrsqrt.f32 %v89_v46 }
  0xaf   :  { %153 = vrsqrt.f32 %v88_v47 }
  0xb7   :  { %v148_v49 = vpop.eup %147 }
  0xb8   :  { %v150_v52 = vpop.eup %149  ;;  %v95_v53 = vmul.f32 %v148_v49, %v83_v48 }
  0xb9   :  { %v94_v54 = vmul.f32 %v150_v52, %v82_v50 }
  0xba   :  { %v106_v57 = vmul.f32 %v141_v51, %v95_v53 }
  0xbb   :  { %v152_v58 = vpop.eup %151  ;;  %v105_v60 = vmul.f32 %v141_v51, %v94_v54 }
  0xbc   :  { %v154_v61 = vpop.eup %153  ;;  %v97_v62 = vmul.f32 %v152_v58, %v85_v56  ;;  %v117_v63 = vadd.f32 %v142_v55, %v106_v57 }
  0xbd   :  { %v96_v1 = vmul.f32 %v154_v61, %v84_v59  ;;  %v116_v3 = vadd.f32 %v142_v55, %v105_v60 }
  0xbe   :  { %v108_v4 = vmul.f32 %v141_v51, %v97_v62  ;;  %121 = vst.msk [vmem:[#allocation5 + $0x8] sm:$0xff] %vm33_vm0, %v117_v63 }
  0xbf   :  { %v107_v5 = vmul.f32 %v141_v51, %v96_v1  ;;  %120 = vst.msk [vmem:[#allocation5] sm:$0xff] %vm33_vm0, %v116_v3 }
  0xc0   :  { %v119_v6 = vadd.f32 %v142_v55, %v108_v4 }
  0xc1   :  { %v118_v2 = vadd.f32 %v142_v55, %v107_v5 }
  0xc2   :  { %123 = vst.msk [vmem:[#allocation5 + $0x18] sm:$0xff] %vm33_vm0, %v119_v6 }
  0xc3   :  { %122 = vst.msk [vmem:[#allocation5 + $0x10] sm:$0xff] %vm33_vm0, %v118_v2 }
  0xc4   :  { %186 = shalt.err (!%p183_p9)
}
  0xc5   :  { %135 = dma.vmem_to_hbm [thread:$0]  %s130_s22, 512, %s274_s3, [#allocation4], %s200_s15, %s200_s15, %s201_s16  }
  0xc6   :  { %197 = dma.done.wait [#allocation4], 512  }
  0xc7   :  { %198 = vsyncadd [#allocation4], 4294966784 }
  0xc8   :  { %139 = vsyncpa [#allocation3], 1 }
  0xc9   :  { %140 = vsyncpa [#allocation4], 1 }

</bundles_post_ra>
